<compile_context>
chip_gen: v7x
topology: tpu7x:2x2x1
jax: 0.10.0
libtpu: 0.0.40
codegen_flags: <defaults>
</compile_context>

<pallas_src>
import jax
import jax.numpy as jnp
import numpy as np
from jax.experimental import pallas as pl
from jax.experimental.pallas import tpu as pltpu


def _round_up(x: int, m: int) -> int:
    return ((x + m - 1) // m) * m


def dmf_last_action_kernel(act_ref, te_ref, wa_ref, ba_ref, ln_w_ref,
                           wh_ref, bh_ref, out_ref):
    # act_ref : (BB, A)      last-timestep actions                  (f32)
    # te_ref  : (BB, D)      last-timestep time embeddings          (f32/bf16)
    # wa_ref  : (A, D)       embed_action weight, stored (in, out)  (f32)
    # ba_ref  : (1, D)       embed_action bias                      (f32)
    # ln_w_ref: (1, D)       LayerNorm weight (bias=False)          (f32)
    # wh_ref  : (D, A_pad)   head weight, zero lane-padded          (f32/bf16)
    # bh_ref  : (1, A_pad)   head bias, zero lane-padded            (f32)
    # out_ref : (BB, A_pad)

    # Action embedding + timestep embedding (MXU + VPU).
    # NOTE: with K = act_dim (~4) this matmul uses <4% of the MXU contraction;
    # a VPU broadcast-MAC variant is possible but only pays off if the kernel
    # ever becomes MXU-issue-bound (it is HBM/dispatch bound at these sizes).
    a_emb = (jnp.dot(act_ref[...], wa_ref[...],
                     preferred_element_type=jnp.float32)
             + ba_ref[...] + te_ref[...].astype(jnp.float32))

    # Single-pass LayerNorm(eps=1e-5), weight-only affine: var = E[x^2]-mu^2.
    mu = jnp.mean(a_emb, axis=-1, keepdims=True)
    msq = jnp.mean(a_emb * a_emb, axis=-1, keepdims=True)
    var = msq - mu * mu
    x = (a_emb - mu) * jax.lax.rsqrt(var + 1e-5) * ln_w_ref[...]

    # Head: Linear(D, A) + Tanh.  Lane-padded output -> unmasked vst stores.
    logits = (jnp.dot(x.astype(wh_ref.dtype), wh_ref[...],
                      preferred_element_type=jnp.float32)
              + bh_ref[...])
    out_ref[...] = jnp.tanh(logits)


def prepare_params(params, *, use_bf16=False):
    """One-time parameter prep (hoisted out of the per-call path):
    - lane-pad head weight/bias to a multiple of 128 lanes so the kernel's
      output store is lane-dense (tanh(0)=0 in the dead lanes, sliced off),
    - optionally store the matmul-heavy tensors (head weight + timestep
      embedding table) in bf16 to halve their HBM traffic."""
    D, A = params["W_h"].shape
    A_pad = _round_up(A, 128)
    wh, bh = params["W_h"], params["b_h"]
    if A_pad != A:
        wh = jnp.pad(wh, ((0, 0), (0, A_pad - A)))
        bh = jnp.pad(bh, ((0, 0), (0, A_pad - A)))
    w_time = params["W_time"]
    if use_bf16:
        wh = wh.astype(jnp.bfloat16)
        w_time = w_time.astype(jnp.bfloat16)
    return {
        "W_a": params["W_a"], "b_a": params["b_a"], "ln_w": params["ln_w"],
        "W_time": w_time, "W_h_pad": wh, "b_h_pad": bh, "act_dim": A,
    }


def predict_action(states, actions, rtg_idx, timesteps, prepped, *, block_b=512):
    """Equivalent of DecisionMetaformer.predict_action (num_layers=0)."""
    del states, rtg_idx  # dead: output depends only on the last action token
    B, T, A = actions.shape
    D = prepped["W_a"].shape[-1]
    A_pad = prepped["W_h_pad"].shape[-1]

    # Wrapper-side slicing / gather: only the last timestep feeds the output.
    # TODO(synk): for very large B this gather could move in-kernel via
    # num_scalar_prefetch=1 + a pl.Element row-gather on W_time to avoid the
    # intermediate (B, D) te_last array in HBM.
    last_actions = actions[:, T - 1, :]                       # (B, A)
    te_last = prepped["W_time"][timesteps[:, T - 1]]          # (B, D)

    # Batch tiling: whole batch in one block when it fits block_b; otherwise
    # balance the work across >=2 sublane-aligned grid steps so the
    # dimension_semantics=("parallel",) axis shards across both v7x TCs.
    if B <= block_b:
        BB = B
    else:
        BB = min(block_b, _round_up(pl.cdiv(B, 2), 8))
    grid = (pl.cdiv(B, BB),)

    # Scoped-VMEM hint: only set explicitly when the double-buffered footprint
    # would exceed the tightest (v5e, 16 MiB) default.
    est_bytes = 4 * (2 * BB * (A + D + A_pad)
                     + 2 * (A * D + 3 * D + D * A_pad + A_pad))
    cp_kwargs = dict(dimension_semantics=("parallel",))
    if est_bytes + (8 << 20) > (16 << 20):
        cp_kwargs["vmem_limit_bytes"] = int(est_bytes + (8 << 20))

    full2d = lambda i: (0, 0)
    # NOTE: the five stationary weight operands keep default double-buffering;
    # pipeline_mode=pl.Buffered(1) would halve their VMEM footprint but that
    # is <0.2 MiB total at D=128, so we keep the default here.
    # NOTE: the lane-padded (BB, A_pad) output is the right default for
    # small/medium B; at very large B a masked (BB, A) store may win — measure.

    out = pl.pallas_call(
        dmf_last_action_kernel,
        out_shape=jax.ShapeDtypeStruct((B, A_pad), jnp.float32),
        grid_spec=pltpu.PrefetchScalarGridSpec(
            num_scalar_prefetch=0,
            grid=grid,
            in_specs=[
                pl.BlockSpec((BB, A), lambda i: (i, 0)),      # last actions
                pl.BlockSpec((BB, D), lambda i: (i, 0)),      # last time embs
                pl.BlockSpec((A, D), full2d),                 # W_a
                pl.BlockSpec((1, D), full2d),                 # b_a
                pl.BlockSpec((1, D), full2d),                 # ln_w
                pl.BlockSpec((D, A_pad), full2d),             # W_h (padded)
                pl.BlockSpec((1, A_pad), full2d),             # b_h (padded)
            ],
            out_specs=pl.BlockSpec((BB, A_pad), lambda i: (i, 0)),
        ),
        compiler_params=pltpu.CompilerParams(**cp_kwargs),
    )(last_actions, te_last,
      prepped["W_a"], prepped["b_a"], prepped["ln_w"],
      prepped["W_h_pad"], prepped["b_h_pad"])

    out = out[:, :A]
    if A == 1:
        out = out[:, 0]  # mimic torch .squeeze(1) for act_dim == 1
    return out


def init_params(key, state_dim, act_dim, model_dim, max_ep_len):
    ks = jax.random.split(key, 5)
    std = 0.02
    return {
        # nn.Linear weights stored transposed: (in, out); biases zero (init_weights)
        "W_s": (jax.random.normal(ks[0], (state_dim, model_dim)) * std).astype(jnp.float32),
        "b_s": jnp.zeros((1, model_dim), jnp.float32),
        "W_a": (jax.random.normal(ks[1], (act_dim, model_dim)) * std).astype(jnp.float32),
        "b_a": jnp.zeros((1, model_dim), jnp.float32),
        "W_return": (jax.random.normal(ks[2], (1, model_dim)) * std).astype(jnp.float32),
        "W_time": (jax.random.normal(ks[3], (max_ep_len, model_dim)) * std).astype(jnp.float32),
        "ln_w": jnp.ones((1, model_dim), jnp.float32),        # LayerNorm(bias=False)
        "W_h": (jax.random.normal(ks[4], (model_dim, act_dim)) * std).astype(jnp.float32),
        "b_h": jnp.zeros((1, act_dim), jnp.float32),
    }


def reference(states, actions, rtg_idx, timesteps, p):
    """Pure-JAX transcription of PyTorch predict_action (builds the full stack)."""
    te = p["W_time"][timesteps]
    s = states @ p["W_s"] + p["b_s"] + te
    a = actions @ p["W_a"] + p["b_a"] + te
    r = p["W_return"][rtg_idx] + te
    B, T, D = s.shape
    x = jnp.stack([r, s, a], axis=1)                          # (B, 3, T, D)
    x = jnp.transpose(x, (0, 2, 1, 3)).reshape(B, 3 * T, D)
    mu = x.mean(-1, keepdims=True)
    var = ((x - mu) ** 2).mean(-1, keepdims=True)
    xn = (x - mu) / jnp.sqrt(var + 1e-5) * p["ln_w"]
    last = xn[:, -1]                                          # action token @ t=T-1
    out = jnp.tanh(last @ p["W_h"] + p["b_h"])
    return out[:, 0] if out.shape[-1] == 1 else out           # .squeeze(1)


if __name__ == "__main__":
    B, T = 2, 8
    state_dim, act_dim, model_dim, max_ep_len = 16, 4, 128, 64  # lane-dense D

    key = jax.random.PRNGKey(0)
    kp, ks, ka = jax.random.split(key, 3)
    params = init_params(kp, state_dim, act_dim, model_dim, max_ep_len)

    states = jax.random.normal(ks, (B, T, state_dim), jnp.float32)
    actions = jax.random.normal(ka, (B, T, act_dim), jnp.float32)
    rtg_idx = jnp.zeros((B, T), jnp.int32)                    # Embedding(1, D) -> index 0
    timesteps = jnp.tile(jnp.arange(T, dtype=jnp.int32), (B, 1))

    ref = reference(states, actions, rtg_idx, timesteps, params)

    # f32 path (exact semantics)
    prepped = prepare_params(params)                          # one-time prep
    out = predict_action(states, actions, rtg_idx, timesteps, prepped)
    jax.block_until_ready(out)
    np.testing.assert_allclose(np.asarray(out), np.asarray(ref), rtol=1e-5, atol=1e-5)
    assert out.shape == (B, act_dim)

    # bf16-weight path (halves dominant HBM bytes; looser tolerance expected)
    prepped_bf16 = prepare_params(params, use_bf16=True)
    out_bf16 = predict_action(states, actions, rtg_idx, timesteps, prepped_bf16)
    jax.block_until_ready(out_bf16)
    np.testing.assert_allclose(np.asarray(out_bf16), np.asarray(ref),
                               rtol=3e-2, atol=3e-2)

    print("KERNEL_OK")
</pallas_src>

<mosaic_0001>
module attributes {stable_mosaic.version = 11 : i64} {
  func.func @dmf_last_action_kernel(%arg0: i32, %arg1: memref<2x4xf32, #tpu.memory_space<vmem>>, %arg2: memref<2x128xf32, #tpu.memory_space<vmem>>, %arg3: memref<4x128xf32, #tpu.memory_space<vmem>>, %arg4: memref<1x128xf32, #tpu.memory_space<vmem>>, %arg5: memref<1x128xf32, #tpu.memory_space<vmem>>, %arg6: memref<128x128xf32, #tpu.memory_space<vmem>>, %arg7: memref<1x128xf32, #tpu.memory_space<vmem>>, %arg8: memref<2x128xf32, #tpu.memory_space<vmem>>) attributes {dimension_semantics = [#tpu.dimension_semantics<parallel>], iteration_bounds = array<i64: 1>, scalar_prefetch = 0 : i64, scratch_operands = 0 : i64, tpu.core_type = #tpu.core_type<tc>, window_params = [{transform_indices = @transform_0, window_bounds = array<i64: 2, 4>}, {transform_indices = @transform_1, window_bounds = array<i64: 2, 128>}, {pipeline_mode = #tpu.pipeline_mode<synchronous>, transform_indices = @transform_2, window_bounds = array<i64: 4, 128>}, {pipeline_mode = #tpu.pipeline_mode<synchronous>, transform_indices = @transform_3, window_bounds = array<i64: 1, 128>}, {pipeline_mode = #tpu.pipeline_mode<synchronous>, transform_indices = @transform_4, window_bounds = array<i64: 1, 128>}, {pipeline_mode = #tpu.pipeline_mode<synchronous>, transform_indices = @transform_5, window_bounds = array<i64: 128, 128>}, {pipeline_mode = #tpu.pipeline_mode<synchronous>, transform_indices = @transform_6, window_bounds = array<i64: 1, 128>}, {transform_indices = @transform_7, window_bounds = array<i64: 2, 128>}]} {
    %c0 = arith.constant 0 : index
    %c0_0 = arith.constant 0 : index
    %0 = vector.load %arg1[%c0, %c0_0] : memref<2x4xf32, #tpu.memory_space<vmem>>, vector<2x4xf32>
    %c0_1 = arith.constant 0 : index
    %c0_2 = arith.constant 0 : index
    %1 = vector.load %arg3[%c0_1, %c0_2] : memref<4x128xf32, #tpu.memory_space<vmem>>, vector<4x128xf32>
    %cst = arith.constant dense<0.000000e+00> : vector<2x128xf32>
    %2 = tpu.matmul %0, %1, %cst {dimension_numbers = #tpu.dot_dimension_numbers<[1], [0], [0], [1], [0, 0, 1, 1], [], []>} : vector<2x4xf32>, vector<4x128xf32>, vector<2x128xf32> -> vector<2x128xf32>
    %c0_3 = arith.constant 0 : index
    %c0_4 = arith.constant 0 : index
    %3 = vector.load %arg4[%c0_3, %c0_4] : memref<1x128xf32, #tpu.memory_space<vmem>>, vector<1x128xf32>
    %4 = vector.broadcast %3 : vector<1x128xf32> to vector<2x128xf32>
    %5 = arith.addf %2, %4 : vector<2x128xf32>
    %c0_5 = arith.constant 0 : index
    %c0_6 = arith.constant 0 : index
    %6 = vector.load %arg2[%c0_5, %c0_6] : memref<2x128xf32, #tpu.memory_space<vmem>>, vector<2x128xf32>
    %7 = arith.addf %5, %6 : vector<2x128xf32>
    %cst_7 = arith.constant dense<0.000000e+00> : vector<2xf32>
    %8 = vector.multi_reduction <add>, %7, %cst_7 [1] : vector<2x128xf32> to vector<2xf32>
    %9 = vector.shape_cast %8 : vector<2xf32> to vector<2x1xf32>
    %cst_8 = arith.constant 1.280000e+02 : f32
    %10 = vector.broadcast %cst_8 : f32 to vector<2x1xf32>
    %11 = arith.divf %9, %10 : vector<2x1xf32>
    %12 = arith.mulf %7, %7 : vector<2x128xf32>
    %cst_9 = arith.constant dense<0.000000e+00> : vector<2xf32>
    %13 = vector.multi_reduction <add>, %12, %cst_9 [1] : vector<2x128xf32> to vector<2xf32>
    %14 = vector.shape_cast %13 : vector<2xf32> to vector<2x1xf32>
    %cst_10 = arith.constant 1.280000e+02 : f32
    %15 = vector.broadcast %cst_10 : f32 to vector<2x1xf32>
    %16 = arith.divf %14, %15 : vector<2x1xf32>
    %17 = arith.mulf %11, %11 : vector<2x1xf32>
    %18 = arith.subf %16, %17 : vector<2x1xf32>
    %19 = vector.broadcast %11 : vector<2x1xf32> to vector<2x128xf32>
    %20 = arith.subf %7, %19 : vector<2x128xf32>
    %cst_11 = arith.constant 9.99999974E-6 : f32
    %21 = vector.broadcast %cst_11 : f32 to vector<2x1xf32>
    %22 = arith.addf %18, %21 : vector<2x1xf32>
    %23 = math.rsqrt %22 : vector<2x1xf32>
    %24 = vector.broadcast %23 : vector<2x1xf32> to vector<2x128xf32>
    %25 = arith.mulf %20, %24 : vector<2x128xf32>
    %c0_12 = arith.constant 0 : index
    %c0_13 = arith.constant 0 : index
    %26 = vector.load %arg5[%c0_12, %c0_13] : memref<1x128xf32, #tpu.memory_space<vmem>>, vector<1x128xf32>
    %27 = vector.broadcast %26 : vector<1x128xf32> to vector<2x128xf32>
    %28 = arith.mulf %25, %27 : vector<2x128xf32>
    %c0_14 = arith.constant 0 : index
    %c0_15 = arith.constant 0 : index
    %29 = vector.load %arg6[%c0_14, %c0_15] : memref<128x128xf32, #tpu.memory_space<vmem>>, vector<128x128xf32>
    %cst_16 = arith.constant dense<0.000000e+00> : vector<2x128xf32>
    %30 = tpu.matmul %28, %29, %cst_16 {dimension_numbers = #tpu.dot_dimension_numbers<[1], [0], [0], [1], [0, 0, 1, 1], [], []>} : vector<2x128xf32>, vector<128x128xf32>, vector<2x128xf32> -> vector<2x128xf32>
    %c0_17 = arith.constant 0 : index
    %c0_18 = arith.constant 0 : index
    %31 = vector.load %arg7[%c0_17, %c0_18] : memref<1x128xf32, #tpu.memory_space<vmem>>, vector<1x128xf32>
    %32 = vector.broadcast %31 : vector<1x128xf32> to vector<2x128xf32>
    %33 = arith.addf %30, %32 : vector<2x128xf32>
    %34 = math.tanh %33 : vector<2x128xf32>
    %c0_19 = arith.constant 0 : index
    %c0_20 = arith.constant 0 : index
    %35 = vector.load %arg8[%c0_19, %c0_20] : memref<2x128xf32, #tpu.memory_space<vmem>>, vector<2x128xf32>
    tpu.vector_store %arg8[%c0_19, %c0_20], %34 {strides = array<i32>} : memref<2x128xf32, #tpu.memory_space<vmem>>, vector<2x128xf32>,
    return
  }
  func.func @transform_0(%arg0: i32) -> (i32, i32) {
    %c0_i32 = arith.constant 0 : i32
    %c0_i32_0 = arith.constant 0 : i32
    return %arg0, %c0_i32 : i32, i32
  }
  func.func @transform_1(%arg0: i32) -> (i32, i32) {
    %c0_i32 = arith.constant 0 : i32
    %c0_i32_0 = arith.constant 0 : i32
    return %arg0, %c0_i32 : i32, i32
  }
  func.func @transform_2(%arg0: i32) -> (i32, i32) {
    %c0_i32 = arith.constant 0 : i32
    %c0_i32_0 = arith.constant 0 : i32
    %c0_i32_1 = arith.constant 0 : i32
    return %c0_i32, %c0_i32_0 : i32, i32
  }
  func.func @transform_3(%arg0: i32) -> (i32, i32) {
    %c0_i32 = arith.constant 0 : i32
    %c0_i32_0 = arith.constant 0 : i32
    %c0_i32_1 = arith.constant 0 : i32
    return %c0_i32, %c0_i32_0 : i32, i32
  }
  func.func @transform_4(%arg0: i32) -> (i32, i32) {
    %c0_i32 = arith.constant 0 : i32
    %c0_i32_0 = arith.constant 0 : i32
    %c0_i32_1 = arith.constant 0 : i32
    return %c0_i32, %c0_i32_0 : i32, i32
  }
  func.func @transform_5(%arg0: i32) -> (i32, i32) {
    %c0_i32 = arith.constant 0 : i32
    %c0_i32_0 = arith.constant 0 : i32
    %c0_i32_1 = arith.constant 0 : i32
    return %c0_i32, %c0_i32_0 : i32, i32
  }
  func.func @transform_6(%arg0: i32) -> (i32, i32) {
    %c0_i32 = arith.constant 0 : i32
    %c0_i32_0 = arith.constant 0 : i32
    %c0_i32_1 = arith.constant 0 : i32
    return %c0_i32, %c0_i32_0 : i32, i32
  }
  func.func @transform_7(%arg0: i32) -> (i32, i32) {
    %c0_i32 = arith.constant 0 : i32
    %c0_i32_0 = arith.constant 0 : i32
    return %arg0, %c0_i32 : i32, i32
  }
}

</mosaic_0001>

<bundles_post_ra>
// kernel: tpu_custom_call.1
= control target key start
LH: loop header
LB: loop body
LE: loop exit
PB: predicated region body
PF: predicated region fallthrough
CT: control target
= control target key end

     0   :  { %12 = vsyncpa [#allocation3], 0  ;;  %s556_s0 = inlined_call_operand.hbm [shape: f32[2,4], index: 0, kind: input, shape index: {}]   ;;  %s557_s1 = inlined_call_operand.vmem [shape: f32[2,128], index: 1, kind: input, shape index: {}]   ;;  %s558_s2 = inlined_call_operand.vmem [shape: f32[4,128], index: 2, kind: input, shape index: {}]   ;;  %s559_s3 = inlined_call_operand.vmem [shape: f32[1,128], index: 3, kind: input, shape index: {}]   ;;  %s560_s4 = inlined_call_operand.vmem [shape: f32[1,128], index: 4, kind: input, shape index: {}]   ;;  %s561_s5 = inlined_call_operand.hbm [shape: f32[128,128], index: 5, kind: input, shape index: {}]   ;;  %s562_s6 = inlined_call_operand.vmem [shape: f32[1,128], index: 6, kind: input, shape index: {}]   ;;  %s563_s7 = inlined_call_operand.hbm [shape: f32[2,128], index: 7, kind: output, shape index: {}]  }
   0x1   :  { %13 = vsyncpa [#allocation6], 0 }
   0x2   :  { %14 = vsyncpa [#allocation4], 0  ;;  %s450_s24 = smov [#allocation2]   ;;  %s451_s26 = smov [#allocation5]  }
   0x3   :  { %s21_s25 = sshll.u32 %s450_s24, 4  ;;  %s38_s27 = sshll.u32 %s451_s26, 4  ;;  %s22_s25 = int_to_ptr.vmem [resolvable:$true] %s21_s25  ;;  %s498_s27 = int_to_ptr.vmem [resolvable:$true] %s38_s27 }
   0x4   :  { %s378_s30 = scalar_lea.hbm %s556_s0, 32 }
   0x5   :  { %p379_p0 = scmp.ne.s32.totalorder %s556_s0, %s378_s30  ;;  %p382_p1 = scmp.lt.u32.totalorder %s378_s30, %s556_s0 }
   0x7   :  { %p384_p2 = pnand %p382_p1, %p379_p0 }
   0x9   :  { %387 = shalt.err (!%p384_p2)
}
   0xa   :  { %s388_s12 = scalar_lea.vmem %s22_s25, 32  ;;  %p393_p4 = scmp.lt.s32.totalorder %s22_s25, %s22_s25 }
   0xb   :  { %p389_p3 = scmp.ne.s32.totalorder %s22_s25, %s388_s12  ;;  %p394_p5 = scmp.lt.s32.totalorder %s388_s12, %s388_s12 }
   0xd   :  { %p395_p6 = por %p394_p5, %p393_p4 }
   0xf   :  { %p396_p7 = pnand %p395_p6, %p389_p3 }
  0x11   :  { %399 = shalt.err (!%p396_p7)
}
  0x12   :  { %24 = dma.hbm_to_vmem [thread:$0]  %s556_s0, 32, %s22_s25, [#allocation3]  }
  0x13   :  { %s400_s17 = scalar_lea.hbm %s561_s5, 2048 }
  0x14   :  { %p401_p8 = scmp.ne.s32.totalorder %s561_s5, %s400_s17  ;;  %p404_p9 = scmp.lt.u32.totalorder %s400_s17, %s561_s5 }
  0x16   :  { %p406_p10 = pnand %p404_p9, %p401_p8 }
  0x18   :  { %409 = shalt.err (!%p406_p10)
}
  0x19   :  { %s410_s22 = scalar_lea.vmem %s498_s27, 2048  ;;  %p415_p12 = scmp.lt.s32.totalorder %s498_s27, %s498_s27 }
  0x1a   :  { %p411_p11 = scmp.ne.s32.totalorder %s498_s27, %s410_s22  ;;  %p416_p13 = scmp.lt.s32.totalorder %s410_s22, %s410_s22 }
  0x1c   :  { %p417_p0 = por %p416_p13, %p415_p12 }
  0x1e   :  { %p418_p1 = pnand %p417_p0, %p411_p11 }
  0x20   :  { %421 = shalt.err (!%p418_p1)
}
  0x21   :  { %s452_s0 = smov 128   ;;  %s453_s23 = smov 8  }
  0x22   :  { %44 = dma.hbm_to_vmem [thread:$0]  %s561_s5, 2048, %s498_s27, [#allocation6], %s452_s0, %s452_s0, %s453_s23  }
  0x23   :  { %444 = dma.done.wait [#allocation3], 32  }
  0x24   :  { %445 = vsyncadd [#allocation3], 4294967264 }
  0x25   :  { %446 = dma.done.wait [#allocation6], 2048  }
  0x26   :  { %447 = vsyncadd [#allocation6], 4294965248  ;;  %v454_v0 = vmov 0.0   ;;  %vm455_vm0 = vmmov 0   ;;  %vm66_vm1 = vcmask 1043456   ;;  %vm62_vm2 = vcmask 31744  }
  0x27   :  { %302 = vmatprep.subr.mxu0 %v454_v0  ;;  %304 = vmatprep.mubr.msk.f32.mxu0 %vm455_vm0, %v454_v0  ;;  %v54_v1 = vld [vmem:[%s558_s2] sm:$0xf]  ;;  %v53_v2 = vld [vmem:[#allocation2] sm:$0x3]  ;;  %v167_v3 = vld [vmem:[#allocation5] sm:$0xff]  ;;  %v456_v6 = vmov 0.0|0.0  }
  0x28   :  { %339 = vmatprep.mubr.msk.f32.mxu1 %vm455_vm0, %v454_v0  ;;  %303 = vmatpush3.msk.msra.mxu0 %vm66_vm1, %v54_v1  ;;  %v168_v4 = vld [vmem:[#allocation5 + $0x8] sm:$0xff]  ;;  %v169_v5 = vld [vmem:[#allocation5 + $0x10] sm:$0xff]  ;;  %v170_v8 = vld [vmem:[#allocation5 + $0x18] sm:$0xff]  ;;  %vm142_vm3 = vcmask 1041408   ;;  %s457_s9 = smov [#allocation7]  }
  0x29   :  { %305 = vmatmul.mubr.msk.f32.vlgmr.msra.gmra.mrb[0].mxu0 %vm62_vm2, %v53_v2  ;;  %342 = vmatprep.subr.bf16.mxu1 %v456_v6  ;;  %v343_v7 = vpack.c.bf16 %v168_v4, %v167_v3  ;;  %v346_v9 = vpack.c.bf16 %v170_v8, %v169_v5  ;;  %v278_v10 = vld [vmem:[%s559_s3] ss:$0 sm:$0xff]  ;;  %v171_v19 = vld [vmem:[#allocation5 + $0x20] sm:$0xff]  ;;  %v172_v20 = vld [vmem:[#allocation5 + $0x28] sm:$0xff]  ;;  %s268_s10 = sshll.u32 %s457_s9, 4  ;;  %s269_s10 = int_to_ptr.vmem [resolvable:$true] %s268_s10 }
  0x2a   :  { %v140_v12 = vld [vmem:[%s557_s1] sm:$0x3]  ;;  %v349_v21 = vpack.c.bf16 %v172_v20, %v171_v19  ;;  %v174_v23 = vld [vmem:[#allocation5 + $0x38] sm:$0xff]  ;;  %v175_v25 = vld [vmem:[#allocation5 + $0x40] sm:$0xff]  ;;  %s422_s11 = scalar_lea.vmem %s269_s10, 32  ;;  %p427_p3 = scmp.lt.s32.totalorder %s269_s10, %s269_s10 }
  0x2b   :  { %344 = vmatpush3.bf16.msra.mxu1 %v343_v7  ;;  %v173_v22 = vld [vmem:[#allocation5 + $0x30] sm:$0xff]  ;;  %v176_v26 = vld [vmem:[#allocation5 + $0x48] sm:$0xff]  ;;  %v178_v29 = vld [vmem:[#allocation5 + $0x58] sm:$0xff]  ;;  %p423_p2 = scmp.ne.s32.totalorder %s269_s10, %s422_s11  ;;  %p428_p4 = scmp.lt.s32.totalorder %s422_s11, %s422_s11 }
  0x2c   :  { %345 = vmatprep.subr.bf16.mxu1 %v456_v6  ;;  %v352_v24 = vpack.c.bf16 %v174_v23, %v173_v22  ;;  %v355_v27 = vpack.c.bf16 %v176_v26, %v175_v25  ;;  %v177_v28 = vld [vmem:[#allocation5 + $0x50] sm:$0xff]  ;;  %v179_v31 = vld [vmem:[#allocation5 + $0x60] sm:$0xff]  ;;  %v180_v32 = vld [vmem:[#allocation5 + $0x68] sm:$0xff] }
  0x2d   :  { %v358_v30 = vpack.c.bf16 %v178_v29, %v177_v28  ;;  %v361_v33 = vpack.c.bf16 %v180_v32, %v179_v31  ;;  %v181_v34 = vld [vmem:[#allocation5 + $0x70] sm:$0xff]  ;;  %v182_v35 = vld [vmem:[#allocation5 + $0x78] sm:$0xff]  ;;  %p429_p5 = por %p428_p4, %p427_p3 }
  0x2e   :  { %v364_v36 = vpack.c.bf16 %v182_v35, %v181_v34  ;;  %v281_v46 = vld [vmem:[%s560_s4] ss:$0 sm:$0xff] }
  0x2f   :  { %347 = vmatpush3.bf16.msra.mxu1 %v346_v9  ;;  %v282_v49 = vld [vmem:[%s562_s6] ss:$0 sm:$0xff]  ;;  %p430_p6 = pnand %p429_p5, %p423_p2 }
  0x30   :  { %348 = vmatprep.subr.bf16.mxu1 %v456_v6 }
  0x33   :  { %350 = vmatpush3.bf16.msra.mxu1 %v349_v21 }
  0x34   :  { %351 = vmatprep.subr.bf16.mxu1 %v456_v6 }
  0x37   :  { %353 = vmatpush3.bf16.msra.mxu1 %v352_v24 }
  0x38   :  { %354 = vmatprep.subr.bf16.mxu1 %v456_v6 }
  0x3b   :  { %356 = vmatpush3.bf16.msra.mxu1 %v355_v27 }
  0x3c   :  { %357 = vmatprep.subr.bf16.mxu1 %v456_v6 }
  0x3f   :  { %359 = vmatpush3.bf16.msra.mxu1 %v358_v30 }
  0x40   :  { %360 = vmatprep.subr.bf16.mxu1 %v456_v6 }
  0x43   :  { %362 = vmatpush3.bf16.msra.mxu1 %v361_v33 }
  0x44   :  { %363 = vmatprep.subr.bf16.mxu1 %v456_v6 }
  0x47   :  { %365 = vmatpush3.bf16.msra.mxu1 %v364_v36 }
  0xfc   :  { %v136_v11 = vpop.f32.mrb[0].mxu0 }
  0xfd   :  { %v137_v13 = vadd.f32 %v278_v10, %v136_v11  ;;  %v306_v14 = vpop.f32.mrb[1].mxu0 }
  0xff   :  { %v141_v15 = vadd.f32 %v140_v12, %v137_v13 }
 0x101   :  { %v143_v16 = vsel %vm142_vm3, %v141_v15, 0.0  ;;  %v148_v17 = vmul.f32 %v141_v15, %v141_v15 }
 0x102   :  { %144 = vadd.xlane.f32.xlu0 %v143_v16 }
 0x103   :  { %v149_v18 = vsel %vm142_vm3, %v148_v17, 0.0 }
 0x106   :  { %150 = vadd.xlane.f32.xlu0 %v149_v18 }
 0x18f   :  { %v145_v37 = vpop.xlane.xlu0 %144 }
 0x190   :  { %v147_v38 = vmul.f32 0.0078125, %v145_v37 }
 0x192   :  { %v153_v40 = vmul.f32 %v147_v38, %v147_v38  ;;  %v155_v44 = vsub.f32 %v141_v15, %v147_v38 }
 0x193   :  { %v151_v39 = vpop.xlane.xlu0 %150 }
 0x194   :  { %v152_v41 = vmul.f32 0.0078125, %v151_v39 }
 0x196   :  { %v154_v42 = vsub.f32 %v152_v41, %v153_v40 }
 0x198   :  { %v156_v43 = vadd.f32 1e-05, %v154_v42 }
 0x19a   :  { %374 = vrsqrt.f32 %v156_v43 }
 0x1a4   :  { %v375_v45 = vpop.eup %374 }
 0x1a5   :  { %v158_v47 = vmul.f32 %v375_v45, %v155_v44 }
 0x1a7   :  { %v166_v48 = vmul.f32 %v281_v46, %v158_v47 }
 0x1a9   :  { %340 = vmatmul.mubr.f32.vlgmr.msra.gmra.mrb[0].mxu1 %v166_v48 }
 0x27c   :  { %v256_v50 = vpop.f32.mrb[0].mxu1 }
 0x27d   :  { %v257_v51 = vadd.f32 %v282_v49, %v256_v50  ;;  %v341_v52 = vpop.f32.mrb[1].mxu1 }
 0x27f   :  { %376 = vtanh.f32 %v257_v51 }
 0x289   :  { %v377_v53 = vpop.eup %376 }
 0x28a   :  { %261 = vst [vmem:[#allocation7] sm:$0x3] %v377_v53 }
 0x28b   :  { %433 = shalt.err (!%p430_p6)
}
 0x28c   :  { %s434_s6 = scalar_lea.hbm %s563_s7, 32 }
 0x28d   :  { %p435_p7 = scmp.ne.s32.totalorder %s563_s7, %s434_s6  ;;  %p438_p8 = scmp.lt.u32.totalorder %s434_s6, %s563_s7 }
 0x28f   :  { %p440_p9 = pnand %p438_p8, %p435_p7 }
 0x291   :  { %443 = shalt.err (!%p440_p9)
}
 0x292   :  { %271 = dma.vmem_to_hbm [thread:$0]  %s269_s10, 32, %s563_s7, [#allocation4]  }
 0x293   :  { %448 = dma.done.wait [#allocation4], 32  }
 0x294   :  { %449 = vsyncadd [#allocation4], 4294967264 }
 0x295   :  { %275 = vsyncpa [#allocation3], 1 }
 0x296   :  { %276 = vsyncpa [#allocation6], 1 }
 0x297   :  { %277 = vsyncpa [#allocation4], 1 }

</bundles_post_ra>
